<compile_context>
chip_gen: v6e
topology: v6e:2x2x1
jax: 0.10.0
libtpu: 0.0.40
codegen_flags: <defaults>
</compile_context>

<pallas_src>
import numpy as np
import jax
import jax.numpy as jnp
from jax.experimental import pallas as pl
from jax.experimental.pallas import tpu as pltpu


def _bilinear_interp_matrix(t_in: int, t_out: int) -> np.ndarray:
    """(t_in, t_out) matrix M such that (x @ M)[:, j] reproduces
    F.interpolate(mode='bilinear', align_corners=False) along T (W axis is size 1)."""
    m = np.zeros((t_in, t_out), dtype=np.float32)
    if t_in == t_out:
        np.fill_diagonal(m, 1.0)
        return m
    ratio = t_in / t_out
    for j in range(t_out):
        src = max(ratio * (j + 0.5) - 0.5, 0.0)
        i0 = int(src)
        i1 = i0 + (1 if i0 < t_in - 1 else 0)
        l1 = src - i0
        m[i0, j] += 1.0 - l1
        m[i1, j] += l1
    return m


def _fused_weight(t_in: int, t_out: int, h: int, wv: int, wn: int) -> np.ndarray:
    """(Tv*H*Wv, Tn*Wn) weight folding spatial mean + bilinear interp + width broadcast."""
    w = _bilinear_interp_matrix(t_in, t_out) / float(h * wv)      # fold the spatial mean
    return np.kron(w, np.ones((h * wv, wn), dtype=np.float32))    # fold the width broadcast


def _merge_kernel(net_ref, vid_ref, w2_ref, out_ref):
    # net_ref: (Bb, Cn, L)   vid_ref: (Bb, Cv, K)   w2_ref: (K, L)   out_ref: (Bb, Cn+Cv, L)
    bb, cn, _ = net_ref.shape
    # pass-through copy of the audio-net channels (lane-dense, unmasked stores)
    out_ref[:, :cn, :] = net_ref[...].astype(out_ref.dtype)
    # fused mean + interp + broadcast: one MXU matmul per batch element (f32 accumulation)
    w2 = w2_ref[...]
    for i in range(bb):  # bb is a small static Python int -> unrolled
        slab = jnp.dot(vid_ref[i], w2, preferred_element_type=jnp.float32)   # (Cv, L)
        out_ref[i, cn:, :] = slab.astype(out_ref.dtype)


def _vmem_limit_bytes() -> int:
    cap = 64 << 20                                   # safe default (v7x physical VMEM)
    try:
        info = pltpu.get_tpu_info()
        c = getattr(info, "vmem_capacity_bytes", None)
        if c:
            cap = int(c)
    except Exception:
        pass
    # half of physical: 32 MiB on v7x, 64 MiB on v5e/v6e -- always a legal request
    return int(min(cap // 2, 96 << 20))


def _pick_batch_block(B: int, per_batch_bytes: int, weight_bytes: int, budget_bytes: int) -> int:
    # inputs/output tiles are double-buffered by the pipeline; weight DMA'd once
    avail = max(budget_bytes - 2 * weight_bytes, per_batch_bytes)
    cap = max(1, avail // max(1, 2 * per_batch_bytes))
    if B >= 2:
        cap = min(cap, (B + 1) // 2)   # keep >= 2 grid steps so both v7x cores get work
    for cand in range(min(B, cap), 0, -1):
        if B % cand == 0:
            return cand
    return 1


def merge_shift_net_layer(net, vid_net, merge=True):
    """JAX/Pallas equivalent of MergeShiftNetLayer.forward. Returns (out, out)."""
    if not merge:
        return (net, net)

    B, Cn, Tn, Wn = net.shape
    Bv, Cv, Tv, H, Wv = vid_net.shape
    assert B == Bv
    L = Tn * Wn
    K = Tv * H * Wv
    Cout = Cn + Cv
    out_dtype = net.dtype

    # contiguous (free) reshapes into lane-dense 3-D layouts
    net2 = net.reshape(B, Cn, L)
    vid2 = vid_net.reshape(B, Cv, K)
    w2 = jnp.asarray(_fused_weight(Tv, Tn, H, Wv, Wn)).astype(vid_net.dtype)

    per_batch = (Cn * L * net.dtype.itemsize
                 + Cv * K * vid_net.dtype.itemsize
                 + Cout * L * np.dtype(out_dtype).itemsize)
    w2_bytes = K * L * w2.dtype.itemsize
    vmem_limit = _vmem_limit_bytes()
    Bb = _pick_batch_block(B, per_batch, w2_bytes, (vmem_limit * 3) // 4)
    # TODO(synk): for very large video tensors (Cv*Tv*H*Wv per batch element beyond the
    # VMEM budget), add a K/Cv tiling grid axis with a small f32 VMEM accumulator.

    out = pl.pallas_call(
        _merge_kernel,
        out_shape=jax.ShapeDtypeStruct((B, Cout, L), out_dtype),
        grid=(B // Bb,),
        in_specs=[
            pl.BlockSpec((Bb, Cn, L), lambda b: (b, 0, 0)),
            pl.BlockSpec((Bb, Cv, K), lambda b: (b, 0, 0)),
            pl.BlockSpec((K, L), lambda b: (0, 0)),
        ],
        out_specs=pl.BlockSpec((Bb, Cout, L), lambda b: (b, 0, 0)),
        compiler_params=pltpu.CompilerParams(
            dimension_semantics=("parallel",),
            vmem_limit_bytes=vmem_limit,
        ),
    )(net2, vid2, w2)

    out = out.reshape(B, Cout, Tn, Wn)
    return (out, out)


def _reference_numpy(net, vid):
    """Independent numpy re-implementation of the PyTorch forward (merge=True)."""
    net = np.asarray(net, dtype=np.float32)
    vid = np.asarray(vid, dtype=np.float32)
    B, Cn, Tn, Wn = net.shape
    _, Cv, Tv, H, Wv = vid.shape
    vid_mean = vid.mean(axis=(3, 4))                   # (B, Cv, Tv)
    if Tn != Tv:
        ratio = Tv / Tn
        out = np.zeros((B, Cv, Tn), dtype=np.float32)
        for j in range(Tn):
            src = max(ratio * (j + 0.5) - 0.5, 0.0)
            i0 = int(src)
            i1 = i0 + (1 if i0 < Tv - 1 else 0)
            l1 = src - i0
            out[:, :, j] = (1.0 - l1) * vid_mean[:, :, i0] + l1 * vid_mean[:, :, i1]
        vid_interp = out
    else:
        vid_interp = vid_mean
    vid_rep = np.repeat(vid_interp[:, :, :, None], Wn, axis=3)  # (B, Cv, Tn, Wn)
    return np.concatenate([net, vid_rep], axis=1)


if __name__ == "__main__":
    key = jax.random.PRNGKey(0)
    k1, k2 = jax.random.split(key)

    # small shapes consistent with the forward: net is 4-D NCHW, vid_net is 5-D
    B, Cn, Tn, Wn = 2, 4, 16, 16
    Cv, Tv, H, Wv = 4, 8, 8, 8

    net = jax.random.normal(k1, (B, Cn, Tn, Wn), dtype=jnp.float32)
    vid_net = jax.random.normal(k2, (B, Cv, Tv, H, Wv), dtype=jnp.float32)

    out_a, out_b = merge_shift_net_layer(net, vid_net, merge=True)
    out_a = jax.block_until_ready(out_a)
    out_b = jax.block_until_ready(out_b)

    ref = _reference_numpy(np.asarray(net), np.asarray(vid_net))
    np.testing.assert_allclose(np.asarray(out_a), ref, rtol=1e-5, atol=1e-5)
    np.testing.assert_allclose(np.asarray(out_b), ref, rtol=1e-5, atol=1e-5)

    print("KERNEL_OK")
</pallas_src>

<mosaic_0001>
module attributes {stable_mosaic.version = 11 : i64} {
  func.func @_merge_kernel(%arg0: i32, %arg1: memref<1x4x256xf32, #tpu.memory_space<vmem>>, %arg2: memref<1x4x512xf32, #tpu.memory_space<vmem>>, %arg3: memref<512x256xf32, #tpu.memory_space<vmem>>, %arg4: memref<1x8x256xf32, #tpu.memory_space<vmem>>) attributes {dimension_semantics = [#tpu.dimension_semantics<parallel>], iteration_bounds = array<i64: 2>, scalar_prefetch = 0 : i64, scratch_operands = 0 : i64, tpu.core_type = #tpu.core_type<tc>, window_params = [{transform_indices = @transform_0, window_bounds = array<i64: 1, 4, 256>}, {transform_indices = @transform_1, window_bounds = array<i64: 1, 4, 512>}, {pipeline_mode = #tpu.pipeline_mode<synchronous>, transform_indices = @transform_2, window_bounds = array<i64: 512, 256>}, {transform_indices = @transform_3, window_bounds = array<i64: 1, 8, 256>}]} {
    %c0 = arith.constant 0 : index
    %c0_0 = arith.constant 0 : index
    %c0_1 = arith.constant 0 : index
    %0 = vector.load %arg1[%c0, %c0_0, %c0_1] : memref<1x4x256xf32, #tpu.memory_space<vmem>>, vector<1x4x256xf32>
    %c0_2 = arith.constant 0 : index
    %c0_3 = arith.constant 0 : index
    %c0_4 = arith.constant 0 : index
    %1 = vector.load %arg4[%c0_2, %c0_3, %c0_4] : memref<1x8x256xf32, #tpu.memory_space<vmem>>, vector<1x4x256xf32>
    tpu.vector_store %arg4[%c0_2, %c0_3, %c0_4], %0 {strides = array<i32>} : memref<1x8x256xf32, #tpu.memory_space<vmem>>, vector<1x4x256xf32>,
    %c0_5 = arith.constant 0 : index
    %c0_6 = arith.constant 0 : index
    %2 = vector.load %arg3[%c0_5, %c0_6] : memref<512x256xf32, #tpu.memory_space<vmem>>, vector<512x256xf32>
    %c0_7 = arith.constant 0 : index
    %c0_8 = arith.constant 0 : index
    %c0_9 = arith.constant 0 : index
    %3 = vector.load %arg2[%c0_7, %c0_8, %c0_9] : memref<1x4x512xf32, #tpu.memory_space<vmem>>, vector<1x4x512xf32>
    %4 = vector.shape_cast %3 : vector<1x4x512xf32> to vector<4x512xf32>
    %cst = arith.constant dense<0.000000e+00> : vector<4x256xf32>
    %5 = tpu.matmul %4, %2, %cst {dimension_numbers = #tpu.dot_dimension_numbers<[1], [0], [0], [1], [0, 0, 1, 1], [], []>} : vector<4x512xf32>, vector<512x256xf32>, vector<4x256xf32> -> vector<4x256xf32>
    %c0_10 = arith.constant 0 : index
    %c4 = arith.constant 4 : index
    %c0_11 = arith.constant 0 : index
    %6 = vector.load %arg4[%c0_10, %c4, %c0_11] : memref<1x8x256xf32, #tpu.memory_space<vmem>>, vector<1x4x256xf32>
    %7 = vector.shape_cast %6 : vector<1x4x256xf32> to vector<4x256xf32>
    %8 = vector.shape_cast %5 : vector<4x256xf32> to vector<1x4x256xf32>
    tpu.vector_store %arg4[%c0_10, %c4, %c0_11], %8 {strides = array<i32>} : memref<1x8x256xf32, #tpu.memory_space<vmem>>, vector<1x4x256xf32>,
    return
  }
  func.func @transform_0(%arg0: i32) -> (i32, i32, i32) {
    %c0_i32 = arith.constant 0 : i32
    %c0_i32_0 = arith.constant 0 : i32
    %c0_i32_1 = arith.constant 0 : i32
    return %arg0, %c0_i32, %c0_i32_0 : i32, i32, i32
  }
  func.func @transform_1(%arg0: i32) -> (i32, i32, i32) {
    %c0_i32 = arith.constant 0 : i32
    %c0_i32_0 = arith.constant 0 : i32
    %c0_i32_1 = arith.constant 0 : i32
    return %arg0, %c0_i32, %c0_i32_0 : i32, i32, i32
  }
  func.func @transform_2(%arg0: i32) -> (i32, i32) {
    %c0_i32 = arith.constant 0 : i32
    %c0_i32_0 = arith.constant 0 : i32
    %c0_i32_1 = arith.constant 0 : i32
    return %c0_i32, %c0_i32_0 : i32, i32
  }
  func.func @transform_3(%arg0: i32) -> (i32, i32, i32) {
    %c0_i32 = arith.constant 0 : i32
    %c0_i32_0 = arith.constant 0 : i32
    %c0_i32_1 = arith.constant 0 : i32
    return %arg0, %c0_i32, %c0_i32_0 : i32, i32, i32
  }
}

</mosaic_0001>

<bundles_post_ra>
// kernel: tpu_custom_call.1
= control target key start
LH: loop header
LB: loop body
LE: loop exit
PB: predicated region body
PF: predicated region fallthrough
CT: control target
= control target key end

     0   :  { %8 = vsyncpa [#allocation3], 0  ;;  %s1129_s0 = inlined_call_operand.hbm [shape: f32[2,4,256], index: 0, kind: input, shape index: {}]   ;;  %s1130_s1 = inlined_call_operand.hbm [shape: f32[2,4,512], index: 1, kind: input, shape index: {}]   ;;  %s1131_s2 = inlined_call_operand.hbm [shape: f32[512,256], index: 2, kind: input, shape index: {}]   ;;  %s1132_s3 = inlined_call_operand.hbm [shape: f32[2,8,256], index: 3, kind: output, shape index: {}]  }
   0x1   :  { %10 = vsyncpa [#allocation3 + $0x1], 0 }
   0x2   :  { %11 = vsyncpa [#allocation6], 0 }
   0x3   :  { %13 = vsyncpa [#allocation6 + $0x1], 0 }
   0x4   :  { %14 = vsyncpa [#allocation4], 0 }
   0x5   :  { %16 = vsyncpa [#allocation4 + $0x1], 0  ;;  %s920_s12 = smov 0   ;;  %s922_s13 = smov 0  }
   0x6   :  { %s924_s14 = smov 0   ;;  %s926_s15 = smov 0  }
   0x7 LB: > { %s941_s16 = sadd.s32 4294967295, %s892_s15   ;;  %s648_s17 = sadd.s32 4294967294, %s892_s15   ;;  %s892_s15 = sphi %s926_s15, %s1154_s15   ;;  %s888_s14 = sphi %s924_s14, %s1153_s14   ;;  %s884_s13 = sphi %s922_s13, %s1152_s13   ;;  %s880_s12 = sphi %s920_s12, %s1151_s12  }
   0x8   : > { %p42_p0 = scmp.ne.s32.totalorder %s884_s13, %s880_s12  ;;  %p1133_p1 = scmp.eq.s32.totalorder %s941_s16, 0 }
   0x9   : > { %p119_p3 = scmp.eq.s32.totalorder %s648_s17, 1  ;;  %p649_p5 = scmp.ge.s32.totalorder %s892_s15, 1 }
   0xa   : > { %p950_p4 = por %p1133_p1, %p42_p0  ;;  %p126_p7 = scmp.lt.s32.totalorder %s892_s15, 3 }
   0xb   : > { %p955_p6 = por %p119_p3, %p42_p0  ;;  %s894_s21 = smov [#allocation7]  }
   0xc   : > { %s1137_s18 = scalar_select %p950_p4, 1, 0 }
   0xd   : > { %s1138_s19 = scalar_select %p955_p6, 1, 0 }
   0xe   : > { %p960_p8 = pnand %p649_p5, %p126_p7  ;;  %s138_s22 = sshll.u32 %s894_s21, 4  ;;  %s139_s22 = int_to_ptr.vmem [resolvable:$true] %s138_s22 }
   0xf   : > { %s974_s24 = sadd.s32 1, %s892_s15   ;;  %s29_s25 = sadd.s32 1, %s888_s14 }
  0x10   : > { %s1139_s20 = scalar_select %p960_p8, 1, 0 }
  0x11   : > { %p681_p9 = pneg %p960_p8  ;;  %s26_s26 = ssub.s32 %s892_s15, %s974_s24 }
  0x12   : > { %s749_s27 = scalar_lea.vmem %s139_s22, 16384  ;;  %p757_p5 = scmp.lt.s32.totalorder %s139_s22, %s139_s22 }
  0x13   : > { %p969_p11 = pnand %p681_p9, %p1133_p1  ;;  %p750_p13 = scmp.ne.s32.totalorder %s139_s22, %s749_s27 }
  0x14   : > { %p758_p7 = scmp.lt.s32.totalorder %s749_s27, %s749_s27 }
  0x15   : > { %p740_p12 = pneg %p969_p11 }
  0x16   : > { %p759_p10 = por %p758_p7, %p757_p5 }
  0x17   : > { %p752_p0 = pnand %p750_p13, %p740_p12 }
  0x19   : > { %p753_p3 = pneg %p752_p0 }
  0x1b   : > { %p760_p2 = pnand %p759_p10, %p753_p3 }
  0x1d   : > { %763 = shalt.err (!%p760_p2)
}
  0x1e   : > { %s895_s28 = smov 256   ;;  %s896_s29 = smov 16  }
  0x1f   : > { %684 = dma.hbm_to_vmem [thread:$0]  (!%p969_p11), %s1131_s2, 16384, %s139_s22, [#allocation6], %s895_s28, %s895_s28, %s896_s29  }
  0x20   : > { %p27_p9 = scmp.eq.s32.totalorder %s26_s26, 0  ;;  %p36_p10 = scmp.ne.s32.totalorder %s888_s14, %s884_s13 }
  0x21   : > { %p37_p2 = scmp.eq.s32.totalorder %s892_s15, 0  ;;  %p697_p12 = scmp.lt.s32.totalorder %s892_s15, 2 }
  0x22   : > { %s991_s5 = scalar_select %p27_p9, %s888_s14, %s29_s25  }
  0x23   : > { %p38_p13 = por %p37_p2, %p36_p10  ;;  %p1141_p0 = scmp.eq.s32.totalorder %s941_s16, 1 }
  0x24   : > { %s1000_s7 = sand.u32 1, %s888_s14   ;;  %s668_s8 = sshll.u32 %s892_s15, 7 }
  0x25   : > { %p995_p3 = por %p1141_p0, %p36_p10  ;;  %s652_s9 = sshll.u32 %s1000_s7, 3 }
  0x26   : > { %s1007_s17 = scalar_lea.hbm %s1129_s0, %s668_s8  ;;  %s156_s21 = scalar_lea.vmem [#allocation2], %s652_s9 }
  0x27   : > { %s1142_s6 = scalar_select %p995_p3, 1, 0 }
  0x28   : > { %s164_s22 = sshll.u32 %s156_s21, 4  ;;  %p1009_p11 = pnand %p697_p12, %p38_p13  ;;  %s165_s22 = int_to_ptr.vmem [resolvable:$true] %s164_s22 }
  0x29   : > { %s171_s25 = sand.u32 1, %s892_s15   ;;  %s153_s26 = scalar_lea.sflag [#allocation3], %s1000_s7 }
  0x2a   : > { %s764_s27 = scalar_lea.hbm %s1007_s17, 128  ;;  %p766_p7 = pneg %p1009_p11 }
  0x2b   : > { %p765_p5 = scmp.ne.s32.totalorder %s1007_s17, %s764_s27  ;;  %s769_s30 = scalar_lea.hbm %s1129_s0, 256 }
  0x2c   : > { %p770_p2 = scmp.lt.s32.totalorder %s1007_s17, %s1129_s0  ;;  %p771_p12 = scmp.lt.s32.totalorder %s769_s30, %s764_s27 }
  0x2d   : > { %p767_p9 = pnand %p766_p7, %p765_p5 }
  0x2e   : > { %p772_p13 = por %p771_p12, %p770_p2 }
  0x2f   : > { %p768_p10 = pneg %p767_p9 }
  0x31   : > { %p773_p0 = pnand %p772_p13, %p768_p10 }
  0x33   : > { %776 = shalt.err (!%p773_p0)
}
  0x34   : > { %s777_s9 = scalar_lea.vmem %s165_s22, 128  ;;  %s897_s10 = smov [#allocation2]  }
  0x35   : > { %p778_p1 = scmp.ne.s32.totalorder %s165_s22, %s777_s9  ;;  %s782_s11 = sshll.u32 %s897_s10, 4  ;;  %s783_s11 = int_to_ptr.vmem [resolvable:$false] %s782_s11 }
  0x36   : > { %s784_s21 = scalar_lea.vmem %s783_s11, 256  ;;  %p785_p9 = scmp.lt.s32.totalorder %s165_s22, %s783_s11 }
  0x37   : > { %p780_p6 = pnand %p778_p1, %p766_p7  ;;  %p786_p3 = scmp.lt.s32.totalorder %s784_s21, %s777_s9 }
  0x39   : > { %p781_p5 = pneg %p780_p6  ;;  %p787_p4 = por %p786_p3, %p785_p9 }
  0x3b   : > { %p788_p8 = pnand %p787_p4, %p781_p5 }
  0x3d   : > { %791 = shalt.err (!%p788_p8)
}
  0x3e   : > { %688 = dma.hbm_to_vmem [thread:$0]  (!%p1009_p11), %s1007_s17, 128, %s165_s22, %s153_s26  }
  0x3f   : > { %s655_s27 = sshll.u32 %s1000_s7, 4  ;;  %s669_s28 = sshll.u32 %s892_s15, 8 }
  0x40   : > { %s1040_s4 = scalar_lea.hbm %s1130_s1, %s669_s28  ;;  %s175_s8 = scalar_lea.vmem [#allocation5], %s655_s27 }
  0x41   : > { %s183_s9 = sshll.u32 %s175_s8, 4  ;;  %s172_s10 = scalar_lea.sflag [#allocation6], %s171_s25  ;;  %s184_s9 = int_to_ptr.vmem [resolvable:$true] %s183_s9 }
  0x42   : > { %s792_s11 = scalar_lea.hbm %s1040_s4, 256  ;;  %s797_s22 = scalar_lea.hbm %s1130_s1, 512 }
  0x43   : > { %p793_p1 = scmp.ne.s32.totalorder %s1040_s4, %s792_s11  ;;  %p798_p8 = scmp.lt.s32.totalorder %s1040_s4, %s1130_s1 }
  0x44   : > { %p799_p3 = scmp.lt.s32.totalorder %s797_s22, %s792_s11 }
  0x45   : > { %p795_p4 = pnand %p793_p1, %p766_p7 }
  0x46   : > { %p800_p10 = por %p799_p3, %p798_p8 }
  0x47   : > { %p796_p6 = pneg %p795_p4 }
  0x49   : > { %p801_p2 = pnand %p800_p10, %p796_p6 }
  0x4b   : > { %804 = shalt.err (!%p801_p2)
}
  0x4c   : > { %s805_s27 = scalar_lea.vmem %s184_s9, 256  ;;  %s898_s25 = smov [#allocation5]  }
  0x4d   : > { %p806_p12 = scmp.ne.s32.totalorder %s184_s9, %s805_s27  ;;  %s810_s28 = sshll.u32 %s898_s25, 4  ;;  %s811_s28 = int_to_ptr.vmem [resolvable:$false] %s810_s28 }
  0x4e   : > { %s812_s29 = scalar_lea.vmem %s811_s28, 512  ;;  %p813_p5 = scmp.lt.s32.totalorder %s184_s9, %s811_s28 }
  0x4f   : > { %p808_p13 = pnand %p806_p12, %p766_p7  ;;  %p814_p9 = scmp.lt.s32.totalorder %s812_s29, %s805_s27 }
  0x51   : > { %p809_p0 = pneg %p808_p13  ;;  %p815_p1 = por %p814_p9, %p813_p5 }
  0x53   : > { %p816_p4 = pnand %p815_p1, %p809_p0 }
  0x55   : > { %819 = shalt.err (!%p816_p4)
}
  0x56   : > { %691 = dma.hbm_to_vmem [thread:$0]  (!%p1009_p11), %s1040_s4, 256, %s184_s9, %s172_s10  }
  0x57   : > { %p1144_p6 = scmp.ne.s32.totalorder %s1139_s20, 0 }
  0x58   : > { %s1065_s30 = sand.u32 (!%p1144_p6), 1, %s884_s13   ;;  %p1145_p7 = scmp.ne.s32.totalorder (!%p1144_p6), %s1137_s18, 0 }
  0x59   : > { %192 = sbr.rel (%p1144_p6) target bundleno = 380 (0x17c), region = 32  ;;  %s659_s8 = sshll.u32 (!%p1144_p6), %s1065_s30, 3 }
  0x5a   : > { %s195_s11 = scalar_lea.sflag (!%p1144_p6), [#allocation3], %s1065_s30  ;;  %s1069_s7 = scalar_lea.vmem (!%p1144_p6), [#allocation2], %s659_s8 }
  0x5e   : > { %863 = dma.done.wait (%p1145_p7), %s195_s11, 128  }
  0x5f   : > { %865 = vsyncadd (%p1145_p7), %s195_s11, 4294967168  ;;  %s203_s20 = sand.u32 1, %s941_s16   ;;  %s660_s23 = sshll.u32 %s1065_s30, 4 }
  0x60   : > { %s204_s4 = scalar_lea.sflag [#allocation6], %s203_s20  ;;  %s1079_s9 = scalar_lea.vmem [#allocation5], %s660_s23 }
  0x61   : > { %867 = dma.done.wait (%p1145_p7), %s204_s4, 256  }
  0x62   : > { %869 = vsyncadd (%p1145_p7), %s204_s4, 4294967040  ;;  %p1146_p11 = scmp.eq.s32.totalorder %s941_s16, 0 }
  0x64   : > { %871 = dma.done.wait (%p1146_p11), [#allocation6], 16384   ;;  %p1147_p8 = pmov %p1146_p11 }
  0x65   : > { %v276_v0 = vld [vmem:[#allocation7 + $0xf8] sm:$0xff]  ;;  %v275_v2 = vld [vmem:[#allocation7 + $0xf0] sm:$0xff]  ;;  %v274_v4 = vld [vmem:[#allocation7 + $0xe8] sm:$0xff]  ;;  %s238_s18 = scalar_lea.vmem [#allocation8], %s660_s23  ;;  %s670_s10 = sshll.u32 %s941_s16, 8 }
  0x66   : > { %873 = vsyncadd (%p1147_p8), [#allocation6], 4294950912  ;;  %v340_v1 = vld [vmem:[#allocation7 + $0x2f8] sm:$0xff]  ;;  %381 = vmatprep.subr.mxu0 %v276_v0  ;;  %v339_v3 = vld [vmem:[#allocation7 + $0x2f0] sm:$0xff]  ;;  %s546_s17 = sshll.u32 %s238_s18, 4  ;;  %s544_s21 = scalar_lea.hbm %s1132_s3, %s670_s10  ;;  %s547_s17 = int_to_ptr.vmem [resolvable:$true] %s546_s17 }
  0x67   : > { %452 = vmatprep.subr.mxu1 %v340_v1  ;;  %v338_v5 = vld [vmem:[#allocation7 + $0x2e8] sm:$0xff]  ;;  %382 = vmatpush1.msra.mxu0 %v275_v2  ;;  %v273_v6 = vld [vmem:[#allocation7 + $0xe0] sm:$0xff]  ;;  %v272_v8 = vld [vmem:[#allocation7 + $0xd8] sm:$0xff]  ;;  %s532_s27 = scalar_lea.sflag [#allocation4], %s1065_s30  ;;  %s820_s25 = scalar_lea.vmem %s547_s17, 256 }
  0x68   : > { %453 = vmatpush1.msra.mxu1 %v339_v3  ;;  %v337_v7 = vld [vmem:[#allocation7 + $0x2e0] sm:$0xff]  ;;  %383 = vmatprep.subr.mxu0 %v274_v4  ;;  %v336_v9 = vld [vmem:[#allocation7 + $0x2d8] sm:$0xff]  ;;  %v271_v10 = vld [vmem:[#allocation7 + $0xd0] sm:$0xff]  ;;  %p821_p3 = scmp.ne.s32.totalorder %s547_s17, %s820_s25  ;;  %p1148_p10 = scmp.ne.s32.totalorder %s1142_s6, 0 }
  0x69   : > { %454 = vmatprep.subr.mxu1 %v338_v5  ;;  %v335_v11 = vld [vmem:[#allocation7 + $0x2d0] sm:$0xff]  ;;  %384 = vmatpush1.msra.mxu0 %v273_v6  ;;  %v270_v12 = vld [vmem:[#allocation7 + $0xc8] sm:$0xff]  ;;  %v269_v14 = vld [vmem:[#allocation7 + $0xc0] sm:$0xff]  ;;  %s899_s28 = smov [#allocation8]  }
  0x6a   : > { %455 = vmatpush1.msra.mxu1 %v337_v7  ;;  %v334_v13 = vld [vmem:[#allocation7 + $0x2c8] sm:$0xff]  ;;  %385 = vmatprep.subr.mxu0 %v272_v8  ;;  %v333_v15 = vld [vmem:[#allocation7 + $0x2c0] sm:$0xff]  ;;  %v268_v16 = vld [vmem:[#allocation7 + $0xb8] sm:$0xff]  ;;  %p822_p2 = pnand %p821_p3, %p1148_p10  ;;  %s824_s29 = sshll.u32 %s899_s28, 4  ;;  %s825_s29 = int_to_ptr.vmem [resolvable:$false] %s824_s29 }
  0x6b   : > { %456 = vmatprep.subr.mxu1 %v336_v9  ;;  %386 = vmatpush1.msra.mxu0 %v271_v10  ;;  %v332_v17 = vld [vmem:[#allocation7 + $0x2b8] sm:$0xff]  ;;  %v267_v18 = vld [vmem:[#allocation7 + $0xb0] sm:$0xff]  ;;  %v266_v20 = vld [vmem:[#allocation7 + $0xa8] sm:$0xff]  ;;  %s826_s16 = scalar_lea.vmem %s825_s29, 512  ;;  %p827_p13 = scmp.lt.s32.totalorder %s547_s17, %s825_s29 }
  0x6c   : > { %457 = vmatpush1.msra.mxu1 %v335_v11  ;;  %387 = vmatprep.subr.mxu0 %v270_v12  ;;  %v331_v19 = vld [vmem:[#allocation7 + $0x2b0] sm:$0xff]  ;;  %v330_v21 = vld [vmem:[#allocation7 + $0x2a8] sm:$0xff]  ;;  %v265_v22 = vld [vmem:[#allocation7 + $0xa0] sm:$0xff]  ;;  %p823_p12 = pneg %p822_p2  ;;  %p828_p0 = scmp.lt.s32.totalorder %s826_s16, %s820_s25 }
  0x6d   : > { %458 = vmatprep.subr.mxu1 %v334_v13  ;;  %388 = vmatpush1.msra.mxu0 %v269_v14  ;;  %v329_v23 = vld [vmem:[#allocation7 + $0x2a0] sm:$0xff]  ;;  %v264_v24 = vld [vmem:[#allocation7 + $0x98] sm:$0xff]  ;;  %v263_v26 = vld [vmem:[#allocation7 + $0x90] sm:$0xff] }
  0x6e   : > { %459 = vmatpush1.msra.mxu1 %v333_v15  ;;  %389 = vmatprep.subr.mxu0 %v268_v16  ;;  %v328_v25 = vld [vmem:[#allocation7 + $0x298] sm:$0xff]  ;;  %v327_v27 = vld [vmem:[#allocation7 + $0x290] sm:$0xff]  ;;  %v262_v28 = vld [vmem:[#allocation7 + $0x88] sm:$0xff]  ;;  %p829_p5 = por %p828_p0, %p827_p13 }
  0x6f   : > { %460 = vmatprep.subr.mxu1 %v332_v17  ;;  %390 = vmatpush1.msra.mxu0 %v267_v18  ;;  %v326_v29 = vld [vmem:[#allocation7 + $0x288] sm:$0xff]  ;;  %v261_v30 = vld [vmem:[#allocation7 + $0x80] sm:$0xff]  ;;  %v260_v32 = vld [vmem:[#allocation7 + $0x78] sm:$0xff] }
  0x70   : > { %461 = vmatpush1.msra.mxu1 %v331_v19  ;;  %391 = vmatprep.subr.mxu0 %v266_v20  ;;  %v325_v31 = vld [vmem:[#allocation7 + $0x280] sm:$0xff]  ;;  %v324_v33 = vld [vmem:[#allocation7 + $0x278] sm:$0xff]  ;;  %v259_v34 = vld [vmem:[#allocation7 + $0x70] sm:$0xff]  ;;  %p830_p9 = pnand %p829_p5, %p823_p12 }
  0x71   : > { %462 = vmatprep.subr.mxu1 %v330_v21  ;;  %392 = vmatpush1.msra.mxu0 %v265_v22  ;;  %v323_v35 = vld [vmem:[#allocation7 + $0x270] sm:$0xff]  ;;  %v258_v36 = vld [vmem:[#allocation7 + $0x68] sm:$0xff]  ;;  %v257_v38 = vld [vmem:[#allocation7 + $0x60] sm:$0xff] }
  0x72   : > { %463 = vmatpush1.msra.mxu1 %v329_v23  ;;  %393 = vmatprep.subr.mxu0 %v264_v24  ;;  %v322_v37 = vld [vmem:[#allocation7 + $0x268] sm:$0xff]  ;;  %v321_v39 = vld [vmem:[#allocation7 + $0x260] sm:$0xff]  ;;  %v256_v40 = vld [vmem:[#allocation7 + $0x58] sm:$0xff] }
  0x73   : > { %464 = vmatprep.subr.mxu1 %v328_v25  ;;  %394 = vmatpush1.msra.mxu0 %v263_v26  ;;  %v320_v41 = vld [vmem:[#allocation7 + $0x258] sm:$0xff]  ;;  %v255_v42 = vld [vmem:[#allocation7 + $0x50] sm:$0xff]  ;;  %v254_v44 = vld [vmem:[#allocation7 + $0x48] sm:$0xff] }
  0x74   : > { %465 = vmatpush1.msra.mxu1 %v327_v27  ;;  %395 = vmatprep.subr.mxu0 %v262_v28  ;;  %v319_v43 = vld [vmem:[#allocation7 + $0x250] sm:$0xff]  ;;  %v318_v45 = vld [vmem:[#allocation7 + $0x248] sm:$0xff]  ;;  %v253_v46 = vld [vmem:[#allocation7 + $0x40] sm:$0xff] }
  0x75   : > { %466 = vmatprep.subr.mxu1 %v326_v29  ;;  %396 = vmatpush1.msra.mxu0 %v261_v30  ;;  %v317_v47 = vld [vmem:[#allocation7 + $0x240] sm:$0xff]  ;;  %v252_v48 = vld [vmem:[#allocation7 + $0x38] sm:$0xff]  ;;  %v251_v50 = vld [vmem:[#allocation7 + $0x30] sm:$0xff] }
  0x76   : > { %467 = vmatpush1.msra.mxu1 %v325_v31  ;;  %397 = vmatprep.subr.mxu0 %v260_v32  ;;  %v316_v49 = vld [vmem:[#allocation7 + $0x238] sm:$0xff]  ;;  %v315_v51 = vld [vmem:[#allocation7 + $0x230] sm:$0xff]  ;;  %v250_v52 = vld [vmem:[#allocation7 + $0x28] sm:$0xff] }
  0x77   : > { %468 = vmatprep.subr.mxu1 %v324_v33  ;;  %398 = vmatpush1.msra.mxu0 %v259_v34  ;;  %v314_v53 = vld [vmem:[#allocation7 + $0x228] sm:$0xff]  ;;  %v249_v54 = vld [vmem:[#allocation7 + $0x20] sm:$0xff]  ;;  %v248_v56 = vld [vmem:[#allocation7 + $0x18] sm:$0xff] }
  0x78   : > { %469 = vmatpush1.msra.mxu1 %v323_v35  ;;  %399 = vmatprep.subr.mxu0 %v258_v36  ;;  %v313_v55 = vld [vmem:[#allocation7 + $0x220] sm:$0xff]  ;;  %v312_v57 = vld [vmem:[#allocation7 + $0x218] sm:$0xff]  ;;  %v247_v58 = vld [vmem:[#allocation7 + $0x10] sm:$0xff] }
  0x79   : > { %470 = vmatprep.subr.mxu1 %v322_v37  ;;  %400 = vmatpush1.msra.mxu0 %v257_v38  ;;  %v311_v59 = vld [vmem:[#allocation7 + $0x210] sm:$0xff]  ;;  %v246_v60 = vld [vmem:[#allocation7 + $0x8] sm:$0xff]  ;;  %v245_v62 = vld [vmem:[#allocation7] sm:$0xff] }
  0x7a   : > { %471 = vmatpush1.msra.mxu1 %v321_v39  ;;  %401 = vmatprep.subr.mxu0 %v256_v40  ;;  %v310_v61 = vld [vmem:[#allocation7 + $0x208] sm:$0xff]  ;;  %v309_v63 = vld [vmem:[#allocation7 + $0x200] sm:$0xff]  ;;  %v308_v0 = vld [vmem:[#allocation7 + $0x1f8] sm:$0xff] }
  0x7b   : > { %472 = vmatprep.subr.mxu1 %v320_v41  ;;  %402 = vmatpush1.msra.mxu0 %v255_v42  ;;  %v372_v1 = vld [vmem:[#allocation7 + $0x3f8] sm:$0xff]  ;;  %v307_v2 = vld [vmem:[#allocation7 + $0x1f0] sm:$0xff]  ;;  %v306_v4 = vld [vmem:[#allocation7 + $0x1e8] sm:$0xff] }
  0x7c   : > { %473 = vmatpush1.msra.mxu1 %v319_v43  ;;  %403 = vmatprep.subr.mxu0 %v254_v44  ;;  %v371_v3 = vld [vmem:[#allocation7 + $0x3f0] sm:$0xff]  ;;  %v370_v5 = vld [vmem:[#allocation7 + $0x3e8] sm:$0xff]  ;;  %v305_v6 = vld [vmem:[#allocation7 + $0x1e0] sm:$0xff] }
  0x7d   : > { %474 = vmatprep.subr.mxu1 %v318_v45  ;;  %404 = vmatpush1.msra.mxu0 %v253_v46  ;;  %v369_v7 = vld [vmem:[#allocation7 + $0x3e0] sm:$0xff]  ;;  %v304_v8 = vld [vmem:[#allocation7 + $0x1d8] sm:$0xff]  ;;  %v303_v10 = vld [vmem:[#allocation7 + $0x1d0] sm:$0xff] }
  0x7e   : > { %475 = vmatpush1.msra.mxu1 %v317_v47  ;;  %405 = vmatprep.subr.mxu0 %v252_v48  ;;  %v368_v9 = vld [vmem:[#allocation7 + $0x3d8] sm:$0xff]  ;;  %v367_v11 = vld [vmem:[#allocation7 + $0x3d0] sm:$0xff]  ;;  %v302_v12 = vld [vmem:[#allocation7 + $0x1c8] sm:$0xff] }
  0x7f   : > { %476 = vmatprep.subr.mxu1 %v316_v49  ;;  %406 = vmatpush1.msra.mxu0 %v251_v50  ;;  %v366_v13 = vld [vmem:[#allocation7 + $0x3c8] sm:$0xff]  ;;  %v301_v14 = vld [vmem:[#allocation7 + $0x1c0] sm:$0xff]  ;;  %v300_v16 = vld [vmem:[#allocation7 + $0x1b8] sm:$0xff] }
  0x80   : > { %477 = vmatpush1.msra.mxu1 %v315_v51  ;;  %407 = vmatprep.subr.mxu0 %v250_v52  ;;  %v365_v15 = vld [vmem:[#allocation7 + $0x3c0] sm:$0xff]  ;;  %v364_v17 = vld [vmem:[#allocation7 + $0x3b8] sm:$0xff]  ;;  %v299_v18 = vld [vmem:[#allocation7 + $0x1b0] sm:$0xff] }
  0x81   : > { %478 = vmatprep.subr.mxu1 %v314_v53  ;;  %408 = vmatpush1.msra.mxu0 %v249_v54  ;;  %v363_v19 = vld [vmem:[#allocation7 + $0x3b0] sm:$0xff]  ;;  %v298_v20 = vld [vmem:[#allocation7 + $0x1a8] sm:$0xff]  ;;  %v297_v22 = vld [vmem:[#allocation7 + $0x1a0] sm:$0xff] }
  0x82   : > { %479 = vmatpush1.msra.mxu1 %v313_v55  ;;  %409 = vmatprep.subr.mxu0 %v248_v56  ;;  %v362_v21 = vld [vmem:[#allocation7 + $0x3a8] sm:$0xff]  ;;  %v361_v23 = vld [vmem:[#allocation7 + $0x3a0] sm:$0xff]  ;;  %v296_v24 = vld [vmem:[#allocation7 + $0x198] sm:$0xff] }
  0x83   : > { %480 = vmatprep.subr.mxu1 %v312_v57  ;;  %410 = vmatpush1.msra.mxu0 %v247_v58  ;;  %v360_v25 = vld [vmem:[#allocation7 + $0x398] sm:$0xff]  ;;  %v295_v26 = vld [vmem:[#allocation7 + $0x190] sm:$0xff]  ;;  %v294_v28 = vld [vmem:[#allocation7 + $0x188] sm:$0xff] }
  0x84   : > { %481 = vmatpush1.msra.mxu1 %v311_v59  ;;  %411 = vmatprep.subr.mxu0 %v246_v60  ;;  %v359_v27 = vld [vmem:[#allocation7 + $0x390] sm:$0xff]  ;;  %v358_v29 = vld [vmem:[#allocation7 + $0x388] sm:$0xff]  ;;  %v293_v30 = vld [vmem:[#allocation7 + $0x180] sm:$0xff] }
  0x85   : > { %482 = vmatprep.subr.mxu1 %v310_v61  ;;  %412 = vmatpush1.msra.mxu0 %v245_v62  ;;  %v357_v31 = vld [vmem:[#allocation7 + $0x380] sm:$0xff]  ;;  %v292_v32 = vld [vmem:[#allocation7 + $0x178] sm:$0xff]  ;;  %v291_v34 = vld [vmem:[#allocation7 + $0x170] sm:$0xff] }
  0x86   : > { %483 = vmatpush1.msra.mxu1 %v309_v63  ;;  %413 = vmatprep.subr.mxu0 %v308_v0  ;;  %v356_v33 = vld [vmem:[#allocation7 + $0x378] sm:$0xff]  ;;  %v355_v35 = vld [vmem:[#allocation7 + $0x370] sm:$0xff]  ;;  %v290_v36 = vld [vmem:[#allocation7 + $0x168] sm:$0xff] }
  0x87   : > { %484 = vmatprep.subr.mxu1 %v372_v1  ;;  %414 = vmatpush2.msra.mxu0 %v307_v2  ;;  %v354_v37 = vld [vmem:[#allocation7 + $0x368] sm:$0xff]  ;;  %v289_v38 = vld [vmem:[#allocation7 + $0x160] sm:$0xff]  ;;  %v288_v40 = vld [vmem:[#allocation7 + $0x158] sm:$0xff] }
  0x88   : > { %485 = vmatpush2.msra.mxu1 %v371_v3  ;;  %415 = vmatprep.subr.mxu0 %v306_v4  ;;  %v353_v39 = vld [vmem:[#allocation7 + $0x360] sm:$0xff]  ;;  %v352_v41 = vld [vmem:[#allocation7 + $0x358] sm:$0xff]  ;;  %v287_v42 = vld [vmem:[#allocation7 + $0x150] sm:$0xff] }
  0x89   : > { %486 = vmatprep.subr.mxu1 %v370_v5  ;;  %416 = vmatpush2.msra.mxu0 %v305_v6  ;;  %v351_v43 = vld [vmem:[#allocation7 + $0x350] sm:$0xff]  ;;  %v286_v44 = vld [vmem:[#allocation7 + $0x148] sm:$0xff]  ;;  %v285_v46 = vld [vmem:[#allocation7 + $0x140] sm:$0xff] }
  0x8a   : > { %487 = vmatpush2.msra.mxu1 %v369_v7  ;;  %417 = vmatprep.subr.mxu0 %v304_v8  ;;  %v350_v45 = vld [vmem:[#allocation7 + $0x348] sm:$0xff]  ;;  %v349_v47 = vld [vmem:[#allocation7 + $0x340] sm:$0xff]  ;;  %v284_v48 = vld [vmem:[#allocation7 + $0x138] sm:$0xff] }
  0x8b   : > { %488 = vmatprep.subr.mxu1 %v368_v9  ;;  %418 = vmatpush2.msra.mxu0 %v303_v10  ;;  %v348_v49 = vld [vmem:[#allocation7 + $0x338] sm:$0xff]  ;;  %v283_v50 = vld [vmem:[#allocation7 + $0x130] sm:$0xff]  ;;  %v282_v52 = vld [vmem:[#allocation7 + $0x128] sm:$0xff] }
  0x8c   : > { %489 = vmatpush2.msra.mxu1 %v367_v11  ;;  %419 = vmatprep.subr.mxu0 %v302_v12  ;;  %v347_v51 = vld [vmem:[#allocation7 + $0x330] sm:$0xff]  ;;  %v346_v53 = vld [vmem:[#allocation7 + $0x328] sm:$0xff]  ;;  %v281_v54 = vld [vmem:[#allocation7 + $0x120] sm:$0xff] }
  0x8d   : > { %490 = vmatprep.subr.mxu1 %v366_v13  ;;  %420 = vmatpush2.msra.mxu0 %v301_v14  ;;  %v345_v55 = vld [vmem:[#allocation7 + $0x320] sm:$0xff]  ;;  %v280_v57 = vld [vmem:[#allocation7 + $0x118] sm:$0xff]  ;;  %v279_v60 = vld [vmem:[#allocation7 + $0x110] sm:$0xff] }
  0x8e   : > { %491 = vmatpush2.msra.mxu1 %v365_v15  ;;  %421 = vmatprep.subr.mxu0 %v300_v16  ;;  %v373_v56 = vld [vmem:[%s1079_s9] sm:$0xff]  ;;  %v344_v58 = vld [vmem:[#allocation7 + $0x318] sm:$0xff]  ;;  %v278_v62 = vld [vmem:[#allocation7 + $0x108] sm:$0xff] }
  0x8f   : > { %492 = vmatprep.subr.mxu1 %v364_v17  ;;  %422 = vmatpush2.msra.mxu0 %v299_v18  ;;  %v374_v59 = vld [vmem:[%s1079_s9 + $0x8] sm:$0xff]  ;;  %v343_v61 = vld [vmem:[#allocation7 + $0x310] sm:$0xff]  ;;  %v377_v0 = vcombine.high %v373_v56, %v373_v56  ;;  %v277_v1 = vld [vmem:[#allocation7 + $0x100] sm:$0xff] }
  0x90   : > { %493 = vmatpush2.msra.mxu1 %v363_v19  ;;  %423 = vmatprep.subr.mxu0 %v298_v20  ;;  %v342_v63 = vld [vmem:[#allocation7 + $0x308] sm:$0xff]  ;;  %v378_v2 = vcombine.high %v374_v59, %v374_v59  ;;  %v341_v3 = vld [vmem:[#allocation7 + $0x300] sm:$0xff]  ;;  %v239_v4 = vld [vmem:[%s1069_s7] sm:$0xff] }
  0x91   : > { %494 = vmatprep.subr.mxu1 %v362_v21  ;;  %424 = vmatpush2.msra.mxu0 %v297_v22  ;;  %v241_v5 = vcombine.high %v239_v4, %v239_v4  ;;  %243 = vst [vmem:[%s238_s18] sm:$0xf] %v239_v4 }
  0x92   : > { %495 = vmatpush2.msra.mxu1 %v361_v23  ;;  %425 = vmatprep.subr.mxu0 %v296_v24 }
  0x93   : > { %496 = vmatprep.subr.mxu1 %v360_v25  ;;  %426 = vmatpush2.msra.mxu0 %v295_v26  ;;  %244 = vst [vmem:[%s238_s18 + $0x8] sm:$0xf] %v241_v5 }
  0x94   : > { %497 = vmatpush2.msra.mxu1 %v359_v27  ;;  %427 = vmatprep.subr.mxu0 %v294_v28 }
  0x95   : > { %498 = vmatprep.subr.mxu1 %v358_v29  ;;  %428 = vmatpush2.msra.mxu0 %v293_v30 }
  0x96   : > { %499 = vmatpush2.msra.mxu1 %v357_v31  ;;  %429 = vmatprep.subr.mxu0 %v292_v32 }
  0x97   : > { %500 = vmatprep.subr.mxu1 %v356_v33  ;;  %430 = vmatpush2.msra.mxu0 %v291_v34 }
  0x98   : > { %501 = vmatpush2.msra.mxu1 %v355_v35  ;;  %431 = vmatprep.subr.mxu0 %v290_v36 }
  0x99   : > { %502 = vmatprep.subr.mxu1 %v354_v37  ;;  %432 = vmatpush2.msra.mxu0 %v289_v38 }
  0x9a   : > { %503 = vmatpush2.msra.mxu1 %v353_v39  ;;  %433 = vmatprep.subr.mxu0 %v288_v40 }
  0x9b   : > { %504 = vmatprep.subr.mxu1 %v352_v41  ;;  %434 = vmatpush2.msra.mxu0 %v287_v42 }
  0x9c   : > { %505 = vmatpush2.msra.mxu1 %v351_v43  ;;  %435 = vmatprep.subr.mxu0 %v286_v44 }
  0x9d   : > { %506 = vmatprep.subr.mxu1 %v350_v45  ;;  %436 = vmatpush2.msra.mxu0 %v285_v46 }
  0x9e   : > { %507 = vmatpush2.msra.mxu1 %v349_v47  ;;  %437 = vmatprep.subr.mxu0 %v284_v48 }
  0x9f   : > { %508 = vmatprep.subr.mxu1 %v348_v49  ;;  %438 = vmatpush2.msra.mxu0 %v283_v50 }
  0xa0   : > { %509 = vmatpush2.msra.mxu1 %v347_v51  ;;  %439 = vmatprep.subr.mxu0 %v282_v52 }
  0xa1   : > { %510 = vmatprep.subr.mxu1 %v346_v53  ;;  %440 = vmatpush2.msra.mxu0 %v281_v54 }
  0xa2   : > { %511 = vmatpush2.msra.mxu1 %v345_v55  ;;  %441 = vmatprep.subr.mxu0 %v280_v57 }
  0xa3   : > { %512 = vmatprep.subr.mxu1 %v344_v58  ;;  %442 = vmatpush2.msra.mxu0 %v279_v60 }
  0xa4   : > { %513 = vmatpush2.msra.mxu1 %v343_v61  ;;  %443 = vmatprep.subr.mxu0 %v278_v62 }
  0xa5   : > { %514 = vmatprep.subr.mxu1 %v342_v63  ;;  %444 = vmatpush2.msra.mxu0 %v277_v1 }
  0xa6   : > { %445 = vmatprep.mubr.f32.mxu0 %v377_v0  ;;  %515 = vmatpush2.msra.mxu1 %v341_v3 }
  0xa7   : > { %516 = vmatprep.mubr.f32.mxu1 %v378_v2  ;;  %446 = vmatmul.mubr.f32.vlgmr.msra.gmra.mxu0 %v373_v56 }
  0xa8   : > { %517 = vmatmul.mubr.f32.vlgmr.msra.gmra.mxu1 %v374_v59 }
 0x167   : > { %v447_v6 = vpop.f32.mrf.mxu0 }
 0x168   : > { %v518_v7 = vpop.f32.mrf.mxu1 }
 0x169   : > { %v519_v8 = vadd.f32 %v518_v7, %v447_v6  ;;  %v449_v9 = vpop.f32.mrf.mxu0 }
 0x16a   : > { %v520_v10 = vpop.f32.mrf.mxu1 }
 0x16b   : > { %v525_v11 = vrot.slane %v519_v8, 4  ;;  %v521_v12 = vadd.f32 %v520_v10, %v449_v9 }
 0x16d   : > { %529 = vst [vmem:[%s238_s18] sm:$0xf0] %v525_v11  ;;  %v526_v13 = vrot.slane %v521_v12, 4 }
 0x16f   : > { %530 = vst [vmem:[%s238_s18 + $0x8] sm:$0xf0] %v526_v13 }
 0x170   : > { %833 = shalt.err (!%p830_p9)
}
 0x171   : > { %s834_s8 = scalar_lea.hbm %s544_s21, 256  ;;  %s838_s7 = scalar_lea.hbm %s1132_s3, 512 }
 0x172   : > { %p835_p1 = scmp.ne.s32.totalorder %s544_s21, %s834_s8  ;;  %p839_p7 = scmp.lt.s32.totalorder %s544_s21, %s1132_s3 }
 0x173   : > { %p840_p11 = scmp.lt.s32.totalorder %s838_s7, %s834_s8 }
 0x174   : > { %p836_p4 = pnand %p835_p1, %p1148_p10 }
 0x175   : > { %p841_p8 = por %p840_p11, %p839_p7 }
 0x176   : > { %p837_p6 = pneg %p836_p4 }
 0x178   : > { %p842_p3 = pnand %p841_p8, %p837_p6 }
 0x17a   : > { %845 = shalt.err (!%p842_p3)
}
 0x17b   : > { %679 = dma.vmem_to_hbm [thread:$0]  (%p1148_p10), %s547_s17, 256, %s544_s21, %s532_s27  }
 0x17c PF: > { %s558_s4 = sand.u32 1, %s880_s12   ;;  %p1149_p2 = scmp.ne.s32.totalorder %s1138_s19, 0 }
 0x17d   : > { %p1150_p12 = scmp.ge.s32.totalorder %s892_s15, 2  ;;  %s559_s9 = scalar_lea.sflag [#allocation4], %s558_s4 }
 0x17f   : > { %p693_p13 = pnand %p1150_p12, %p1149_p2 }
 0x181   : > { %p694_p0 = pneg %p693_p13 }
 0x183   : > { %875 = dma.done.wait (%p694_p0), %s559_s9, 256  }
 0x184   : > { %877 = vsyncadd (%p694_p0), %s559_s9, 4294967040  ;;  %p19_p5 = scmp.ge.s32.totalorder %s974_s24, 4   ;;  %s1151_s12 = smov %s884_s13 }
 0x185   : > { %s1152_s13 = smov %s888_s14  ;;  %s1153_s14 = smov %s991_s5 }
 0x186   : > { %s1154_s15 = smov %s974_s24  ;;  %21 = sbr.rel (!%p19_p5) target bundleno = 7 (0x7), region = 94 }
 0x18b   :  { %564 = vsyncpa [#allocation3], 1 }
 0x18c   :  { %566 = vsyncpa [#allocation3 + $0x1], 1 }
 0x18d   :  { %567 = vsyncpa [#allocation6], 1 }
 0x18e   :  { %569 = vsyncpa [#allocation6 + $0x1], 1 }
 0x18f   :  { %570 = vsyncpa [#allocation4], 1 }
 0x190   :  { %572 = vsyncpa [#allocation4 + $0x1], 1 }

</bundles_post_ra>
